<compile_context>
chip_gen: v6e
topology: v6e:2x2x1
jax: 0.10.0
libtpu: 0.0.40
codegen_flags: <defaults>
</compile_context>

<pallas_src>
import functools

import jax
import jax.numpy as jnp
from jax.experimental import pallas as pl
from jax.experimental.pallas import tpu as pltpu


def _cross_en_kernel(sim_ref, partial_ref, *, tm, n_total):
    i = pl.program_id(0)

    x = sim_ref[...]                                            # (TM, N), input dtype
    # Numerically stable row-wise logsumexp; the f32 upcast is fused into the reduce
    # (no standalone f32 slab copy in VMEM).
    row_max = jnp.max(x, axis=-1, keepdims=True)                # (TM, 1)
    ex = jnp.exp((x - row_max).astype(jnp.float32))             # (TM, N) f32 (fused)
    lse = jnp.log(jnp.sum(ex, axis=-1, keepdims=True)) + row_max.astype(jnp.float32)

    # Diagonal pick from the already-resident slab (zero extra HBM traffic): the global
    # diagonal element of row (i*TM + r) sits at column (i*TM + r).  One-hot column
    # mask + row sum; exactly one nonzero per row, so summing in the input dtype is
    # exact.  (A (TM,TM) dynamic-start lane slice would be smaller VPU work, but
    # dynamic minor-dim starts are a lowering risk for unaligned tail tiles.)
    rows = i * tm + jax.lax.broadcasted_iota(jnp.int32, (tm, 1), 0)        # (TM, 1)
    cols = jax.lax.broadcasted_iota(jnp.int32, (tm, n_total), 1)           # (TM, N)
    diag = jnp.sum(jnp.where(cols == rows, x, jnp.zeros_like(x)),
                   axis=-1, keepdims=True).astype(jnp.float32)             # (TM, 1)

    # Mask rows past N (padded tail tile).  jnp.where is a select, so garbage / NaN in
    # padded rows never reaches the partial sum.
    neg_logpt = jnp.where(rows < n_total, lse - diag, 0.0)                 # -log p_t
    partial_ref[0, 0] = jnp.sum(neg_logpt)


def _vmem_limit_bytes():
    """Explicit VMEM limit: honest capacity minus generous headroom (critical on
    64 MiB v7x parts; also lifts v5e's 16 MiB default scoped limit)."""
    try:
        cap = int(pltpu.get_tpu_info().vmem_capacity_bytes)
    except Exception:
        cap = 64 * 1024 * 1024  # conservative fallback (v7x per-core VMEM)
    return max(32 * 1024 * 1024, min(cap - 16 * 1024 * 1024, 100 * 1024 * 1024))


def _round_down_128(x):
    return max(128, (x // 128) * 128)


def _choose_tm(n, in_bytes, budget_bytes):
    """Largest 128-aligned row tile whose (double-buffered) working set fits the
    budget, capped so non-trivial N always gets >= 4 grid steps (pipelining + both
    v7x TensorCores via the 'parallel' row axis)."""

    def cost(tm):
        slab = 2 * tm * n * in_bytes      # double-buffered full-width row slab
        work = tm * n * 4                 # f32 exp intermediate (conservative)
        return slab + work

    if n < 1024:
        # Small matrices: a single block is fine (per-step overhead dominates otherwise).
        if cost(n) <= budget_bytes:
            return n
        cap = n
    else:
        # Never emit a 1-tile grid: keep double-buffering alive and both cores busy.
        cap = _round_down_128(pl.cdiv(n, 4))

    for tm in (1024, 896, 768, 640, 512, 384, 256, 128):
        if tm <= cap and tm <= n and cost(tm) <= budget_bytes:
            return tm
    # TODO(synk): very large N (a (128, N) full-width slab no longer fits VMEM) needs a
    # (row, col) grid with an online logsumexp (running max + rescaled sum in scratch,
    # diag picked up when col_block == row_block); fall back to the smallest row tile.
    return 128


def cross_en(sim_matrix, *, tm=None):
    """Pallas implementation of CrossEn.forward. Returns a scalar float32 loss."""
    n, n2 = sim_matrix.shape
    assert n == n2, "sim_matrix must be square"

    in_bytes = sim_matrix.dtype.itemsize
    vmem_limit = _vmem_limit_bytes()
    if tm is None:
        tm = _choose_tm(n, in_bytes, (vmem_limit * 3) // 4)
    else:
        tm = min(int(tm), n)
        if tm < n:
            assert tm % 128 == 0, "row tile must be a multiple of 128 unless it covers all rows"

    num_tiles = pl.cdiv(n, tm)
    kernel = functools.partial(_cross_en_kernel, tm=tm, n_total=n)

    cost = pl.CostEstimate(
        flops=6 * n * n,
        transcendentals=n * n,
        bytes_accessed=n * n * in_bytes + 4 * num_tiles,   # matrix read exactly once
    )

    partials = pl.pallas_call(
        kernel,
        out_shape=jax.ShapeDtypeStruct((num_tiles, 1), jnp.float32),
        grid_spec=pltpu.PrefetchScalarGridSpec(
            num_scalar_prefetch=0,
            grid=(num_tiles,),
            in_specs=[
                pl.BlockSpec((tm, n), lambda i: (i, 0)),   # full-width row slab (only input)
            ],
            out_specs=pl.BlockSpec((1, 1), lambda i: (i, 0),
                                   memory_space=pltpu.SMEM),
        ),
        compiler_params=pltpu.CompilerParams(
            dimension_semantics=("parallel",),
            vmem_limit_bytes=vmem_limit,
        ),
        cost_estimate=cost,
    )(sim_matrix)

    return jnp.sum(partials) / jnp.float32(n)


def cross_en_ref(sim_matrix):
    """Pure-JAX reference mirroring the PyTorch module."""
    logpt = jax.nn.log_softmax(sim_matrix.astype(jnp.float32), axis=-1)
    return jnp.mean(-jnp.diag(logpt))


if __name__ == "__main__":
    key = jax.random.PRNGKey(0)

    # Primary small case (e.g. a batch of 16 text/video pairs): single block.
    N = 16
    sim = jax.random.normal(key, (N, N), dtype=jnp.float32)
    loss = jax.block_until_ready(cross_en(sim))
    ref = cross_en_ref(sim)
    assert jnp.allclose(loss, ref, atol=1e-4, rtol=1e-5), (loss, ref)

    # Secondary case exercising the multi-tile grid + tail-row masking (N % TM != 0).
    N2 = 200
    sim2 = jax.random.normal(jax.random.PRNGKey(1), (N2, N2), dtype=jnp.float32)
    loss2 = jax.block_until_ready(cross_en(sim2, tm=128))
    ref2 = cross_en_ref(sim2)
    assert jnp.allclose(loss2, ref2, atol=1e-4, rtol=1e-5), (loss2, ref2)

    print("KERNEL_OK")
</pallas_src>

<mosaic_0001>
module attributes {stable_mosaic.version = 11 : i64} {
  func.func @_cross_en_kernel(%arg0: i32, %arg1: memref<16x16xf32, #tpu.memory_space<vmem>>, %arg2: memref<1x1xf32, #tpu.memory_space<smem>>) attributes {dimension_semantics = [#tpu.dimension_semantics<parallel>], iteration_bounds = array<i64: 1>, scalar_prefetch = 0 : i64, scratch_operands = 0 : i64, tpu.core_type = #tpu.core_type<tc>, window_params = [{transform_indices = @transform_0, window_bounds = array<i64: 16, 16>}, {transform_indices = @transform_1, window_bounds = array<i64: 1, 1>}]} {
    %c0 = arith.constant 0 : index
    %c0_0 = arith.constant 0 : index
    %0 = vector.load %arg1[%c0, %c0_0] : memref<16x16xf32, #tpu.memory_space<vmem>>, vector<16x16xf32>
    %cst = arith.constant dense<0xFF800000> : vector<16xf32>
    %1 = vector.multi_reduction <maximumf>, %0, %cst [1] : vector<16x16xf32> to vector<16xf32>
    %2 = vector.shape_cast %1 : vector<16xf32> to vector<16x1xf32>
    %3 = vector.broadcast %2 : vector<16x1xf32> to vector<16x16xf32>
    %4 = arith.subf %0, %3 : vector<16x16xf32>
    %5 = math.exp %4 : vector<16x16xf32>
    %cst_1 = arith.constant dense<0.000000e+00> : vector<16xf32>
    %6 = vector.multi_reduction <add>, %5, %cst_1 [1] : vector<16x16xf32> to vector<16xf32>
    %7 = vector.shape_cast %6 : vector<16xf32> to vector<16x1xf32>
    %8 = math.log %7 : vector<16x1xf32>
    %9 = arith.addf %8, %2 : vector<16x1xf32>
    %c16_i32 = arith.constant 16 : i32
    %10 = arith.muli %arg0, %c16_i32 : i32
    %11 = tpu.iota {dimensions = array<i32: 0>} : vector<16x1xi32>
    %12 = vector.broadcast %10 : i32 to vector<16x1xi32>
    %13 = arith.addi %12, %11 : vector<16x1xi32>
    %14 = tpu.iota {dimensions = array<i32: 1>} : vector<16x16xi32>
    %15 = vector.broadcast %13 : vector<16x1xi32> to vector<16x16xi32>
    %16 = arith.cmpi eq, %14, %15 : vector<16x16xi32>
    %cst_2 = arith.constant 0.000000e+00 : f32
    %17 = vector.broadcast %cst_2 : f32 to vector<16x16xf32>
    %18 = arith.select %16, %0, %17 : vector<16x16xi1>, vector<16x16xf32>
    %cst_3 = arith.constant dense<0.000000e+00> : vector<16xf32>
    %19 = vector.multi_reduction <add>, %18, %cst_3 [1] : vector<16x16xf32> to vector<16xf32>
    %20 = vector.shape_cast %19 : vector<16xf32> to vector<16x1xf32>
    %c16_i32_4 = arith.constant 16 : i32
    %21 = vector.broadcast %c16_i32_4 : i32 to vector<16x1xi32>
    %22 = arith.cmpi slt, %13, %21 : vector<16x1xi32>
    %23 = arith.subf %9, %20 : vector<16x1xf32>
    %cst_5 = arith.constant 0.000000e+00 : f32
    %24 = vector.broadcast %cst_5 : f32 to vector<16x1xf32>
    %25 = arith.select %22, %23, %24 : vector<16x1xi1>, vector<16x1xf32>
    %26 = vector.shape_cast %25 : vector<16x1xf32> to vector<1x16x1xf32>
    %cst_6 = arith.constant dense<0.000000e+00> : vector<1xf32>
    %27 = vector.multi_reduction <add>, %26, %cst_6 [1, 2] : vector<1x16x1xf32> to vector<1xf32>
    %28 = vector.shape_cast %27 : vector<1xf32> to vector<1x1x1xf32>
    %29 = vector.extract %28[0, 0, 0] : f32 from vector<1x1x1xf32>
    %c0_7 = arith.constant 0 : index
    %c0_8 = arith.constant 0 : index
    %30 = memref.load %arg2[%c0_7, %c0_8] : memref<1x1xf32, #tpu.memory_space<smem>>
    memref.store %29, %arg2[%c0_7, %c0_8] : memref<1x1xf32, #tpu.memory_space<smem>>
    return
  }
  func.func @transform_0(%arg0: i32) -> (i32, i32) {
    %c0_i32 = arith.constant 0 : i32
    %c0_i32_0 = arith.constant 0 : i32
    return %arg0, %c0_i32 : i32, i32
  }
  func.func @transform_1(%arg0: i32) -> (i32, i32) {
    %c0_i32 = arith.constant 0 : i32
    %c0_i32_0 = arith.constant 0 : i32
    return %arg0, %c0_i32 : i32, i32
  }
}

</mosaic_0001>

<bundles_post_ra>
// kernel: tpu_custom_call.1
= control target key start
LH: loop header
LB: loop body
LE: loop exit
PB: predicated region body
PF: predicated region fallthrough
CT: control target
= control target key end

     0   :  { %6 = vsyncpa [#allocation3], 0  ;;  %s176_s0 = inlined_call_operand.hbm [shape: f32[16,16], index: 0, kind: input, shape index: {}]   ;;  %s177_s1 = inlined_call_operand.hbm [shape: f32[1,1], index: 1, kind: output, shape index: {}]  }
   0x1   :  { %7 = vsyncpa [#allocation4], 0  ;;  %s150_s6 = smov [#allocation2]  }
   0x2   :  { %s13_s7 = sshll.u32 %s150_s6, 4  ;;  %s14_s7 = int_to_ptr.vmem [resolvable:$true] %s13_s7 }
   0x3   :  { %s126_s8 = scalar_lea.vmem %s14_s7, 256  ;;  %p131_p1 = scmp.lt.s32.totalorder %s14_s7, %s14_s7 }
   0x4   :  { %p127_p0 = scmp.ne.s32.totalorder %s14_s7, %s126_s8  ;;  %p132_p2 = scmp.lt.s32.totalorder %s126_s8, %s126_s8 }
   0x6   :  { %p133_p3 = por %p132_p2, %p131_p1 }
   0x8   :  { %p134_p4 = pnand %p133_p3, %p127_p0 }
   0xa   :  { %137 = shalt.err (!%p134_p4)
}
   0xb   :  { %s151_s9 = smov 128   ;;  %s152_s10 = smov 8  }
   0xc   :  { %19 = dma.hbm_to_vmem [thread:$0]  %s176_s0, 256, %s14_s7, [#allocation3], %s151_s9, %s151_s9, %s152_s10  }
   0xd   :  { %146 = dma.done.wait [#allocation3], 256  }
   0xe   :  { %147 = vsyncadd [#allocation3], 4294967040  ;;  %vm25_vm0 = vcmask 130048   ;;  %v23_v0 = vld [vmem:[#allocation2] sm:$0xff]  ;;  %v24_v1 = vld [vmem:[#allocation2 + $0x8] sm:$0xff]  ;;  %v51_v4 = vlaneseq  ;;  %vm75_vm3 = vcmask 7168  }
   0xf   :  { %v26_v2 = vsel %vm25_vm0, %v23_v0, -inf  ;;  %v29_v3 = vsel %vm25_vm0, %v24_v1, -inf  ;;  %s153_s13 = smov [#allocation5]  }
  0x10   :  { %27 = vmax.xlane.f32.xlu0 %v26_v2  ;;  %v52_v5 = vshrl.u32 %v51_v4, 7  ;;  %v58_v6 = vand.u32 127, %v51_v4 }
  0x12   :  { %vm59_vm1 = vcmp.eq.s32.totalorder %v58_v6, %v52_v5  ;;  %v53_v7 = vadd.s32 8, %v52_v5 }
  0x13   :  { %v61_v8 = vsel %vm59_vm1, %v23_v0, 0.0 }
  0x14   :  { %30 = vmax.xlane.f32.xlu0 %v29_v3  ;;  %v63_v9 = vsel %vm25_vm0, %v61_v8, 0.0  ;;  %vm60_vm2 = vcmp.eq.s32.totalorder %v58_v6, %v53_v7 }
  0x15   :  { %v62_v19 = vsel %vm60_vm2, %v24_v1, 0.0 }
  0x16   :  { %v66_v21 = vsel %vm25_vm0, %v62_v19, 0.0 }
  0x18   :  { %64 = vadd.xlane.f32.xlu0 %v63_v9 }
  0x99   :  { %v28_v10 = vpop.xlane.xlu0 %27 }
  0x9a   :  { %v32_v11 = vsub.f32 %v23_v0, %v28_v10 }
  0x9c   :  { %v34_v12 = vmul.f32 1.442695, %v32_v11 }
  0x9d   :  { %v31_v13 = vpop.xlane.xlu0 %30 }
  0x9e   :  { %110 = vpow2.f32 %v34_v12  ;;  %v33_v14 = vsub.f32 %v24_v1, %v31_v13 }
  0xa0   :  { %v36_v15 = vmul.f32 1.442695, %v33_v14 }
  0xa1   :  { %v65_v28 = vpop.xlane.xlu0 %64 }
  0xa2   :  { %112 = vpow2.f32 %v36_v15 }
  0xab   :  { %v111_v16 = vpop.eup %110 }
  0xac   :  { %v38_v17 = vsel %vm25_vm0, %v111_v16, 0.0 }
  0xad   :  { %39 = vadd.xlane.f32.xlu1 %v38_v17 }
  0xaf   :  { %v113_v18 = vpop.eup %112 }
  0xb0   :  { %v41_v20 = vsel %vm25_vm0, %v113_v18, 0.0 }
  0xb1   :  { %42 = vadd.xlane.f32.xlu1 %v41_v20 }
  0xb5   :  { %67 = vadd.xlane.f32.xlu1 %v66_v21 }
 0x136   :  { %v40_v22 = vpop.xlane.xlu1 %39 }
 0x137   :  { %114 = vlog2.f32 %v40_v22 }
 0x13a   :  { %v43_v23 = vpop.xlane.xlu1 %42 }
 0x13b   :  { %116 = vlog2.f32 %v43_v23 }
 0x13e   :  { %v68_v30 = vpop.xlane.xlu1 %67 }
 0x144   :  { %v115_v24 = vpop.eup %114 }
 0x145   :  { %v45_v25 = vmul.f32 0.6931472, %v115_v24 }
 0x147   :  { %v48_v26 = vadd.f32 %v45_v25, %v28_v10 }
 0x148   :  { %v117_v27 = vpop.eup %116 }
 0x149   :  { %v47_v29 = vmul.f32 0.6931472, %v117_v27  ;;  %v71_v31 = vsub.f32 %v48_v26, %v65_v28 }
 0x14b   :  { %v49_v32 = vadd.f32 %v47_v29, %v31_v13  ;;  %v76_v34 = vsel %vm75_vm3, %v71_v31, 0.0 }
 0x14d   :  { %v72_v33 = vsub.f32 %v49_v32, %v68_v30 }
 0x14f   :  { %v77_v35 = vsel %vm75_vm3, %v72_v33, 0.0 }
 0x150   :  { %v78_v36 = vadd.f32 %v77_v35, %v76_v34 }
 0x152   :  { %79 = vadd.xlane.f32.xlu0 %v78_v36 }
 0x1db   :  { %v80_v37 = vpop.xlane.xlu0 %79 }
 0x1dc   :  { %v81_v38 = vrot.slane %v80_v37, 4 }
 0x1de   :  { %v82_v39 = vadd.f32 %v81_v38, %v80_v37 }
 0x1e0   :  { %v83_v40 = vrot.slane %v82_v39, 2 }
 0x1e2   :  { %v84_v41 = vadd.f32 %v83_v40, %v82_v39 }
 0x1e4   :  { %v85_v42 = vrot.slane %v84_v41, 1 }
 0x1e6   :  { %v86_v43 = vadd.f32 %v85_v42, %v84_v41 }
 0x1e8   :  { %104 = vpush %v86_v43 }
 0x219   :  { %s105_s0 = spop %104 }
 0x21a   :  { %89 = sst [smem:[#allocation5]] %s105_s0 }
 0x21b   :  { %97 = dma.smem_to_hbm %s153_s13, 16, %s177_s1, [#allocation4]  }
 0x21c   :  { %148 = dma.done.wait [#allocation4], 16  }
 0x21d   :  { %149 = vsyncadd [#allocation4], 4294967280 }
 0x21e   :  { %101 = sfence }
 0x21f   :  { %102 = vsyncpa [#allocation3], 1 }
 0x220   :  { %103 = vsyncpa [#allocation4], 1 }

</bundles_post_ra>
